<compile_context>
chip_gen: v6e
topology: v6e:2x2x1
jax: 0.10.0
libtpu: 0.0.40
codegen_flags: <defaults>
</compile_context>

<pallas_src>
import functools

import jax
import jax.numpy as jnp
import numpy as np
from jax.experimental import pallas as pl
from jax.experimental.pallas import tpu as pltpu

EPS = 1e-5  # PyTorch BatchNorm2d default eps


def _round_up(x, m):
    return (x + m - 1) // m * m


def _conv_stats_kernel(xa_ref, xb_ref, mask_ref, w_ref, conv_ref, stats_ref,
                       sum_ref, sq_ref, *, shifts):
    """Pass 1: in-VMEM im2col + MXU conv + per-channel sum/sumsq accumulation."""
    h = pl.program_id(1)
    tile = xa_ref.shape[-1]

    @pl.when(h == 0)
    def _init():
        sum_ref[...] = jnp.zeros_like(sum_ref)
        sq_ref[...] = jnp.zeros_like(sq_ref)

    # Current tile + halo of the padded-width-flattened input.  Every 3x3 tap
    # is a constant lane shift of this buffer, so im2col is 9 static slices.
    xcat = jnp.concatenate([xa_ref[...], xb_ref[...]], axis=-1)   # (Cp, tile+halo)
    patch = jnp.concatenate([xcat[:, s:s + tile] for s in shifts], axis=0)

    conv = jnp.dot(w_ref[...], patch, preferred_element_type=jnp.float32)
    conv_ref[...] = conv.astype(jnp.bfloat16)                     # bf16 intermediate

    # BN statistics: cheap per-lane VPU accumulation; dead padded-width /
    # tail columns are zeroed by the precomputed mask.
    cm = conv * mask_ref[...]
    sum_ref[...] += cm
    sq_ref[...] += cm * cm

    # Lane reduction only once per image (last spatial tile), routed via MXU.
    @pl.when(h == pl.num_programs(1) - 1)
    def _flush():
        ones = jnp.ones((tile, 1), jnp.float32)
        ssum = jnp.dot(sum_ref[...], ones, preferred_element_type=jnp.float32)
        ssq = jnp.dot(sq_ref[...], ones, preferred_element_type=jnp.float32)
        stats_ref[...] = jnp.concatenate([ssum, ssq], axis=1)


def _bn_relu_kernel(conv_ref, stats_ref, gb_ref, out_ref, *, inv_count):
    """Pass 2: BatchNorm (batch statistics) + ReLU, elementwise over conv tiles."""
    stats = stats_ref[...]                               # (Cout_p, 2) f32
    mean = stats[:, 0:1] * inv_count
    # NOTE: one-pass E[x^2] - mean^2 in f32 can lose bits when |mean| >> std on
    # trained nets; a shifted-sum / Welford variant would be more robust.
    var = stats[:, 1:2] * inv_count - mean * mean
    var = jnp.maximum(var, 0.0)                          # guard tiny cancellation
    inv_std = jax.lax.rsqrt(var + EPS)
    scale = gb_ref[:, 0:1] * inv_std                     # gamma / sqrt(var + eps)
    shift = gb_ref[:, 1:2] - mean * scale                # beta  - mean * scale
    out_ref[...] = jnp.maximum(
        conv_ref[...].astype(jnp.float32) * scale + shift, 0.0)


def _pick_tile(P2, hblk, C_pad, Cout_p, K, max_tile_hw):
    """Padding-aware spatial tile choice under a conservative VMEM budget."""
    budget = 22 * 1024 * 1024
    hi = max(hblk, min(_round_up(max_tile_hw, hblk), 4096))

    def footprint(t):
        return (2 * C_pad * t * 2          # tile input block (double-buffered, bf16)
                + 2 * C_pad * hblk * 2     # halo input block
                + 2 * Cout_p * K * 2       # weights (bf16)
                + 2 * Cout_p * t * 2       # conv output block (bf16)
                + 2 * Cout_p * t * 4       # sum / sumsq scratch (f32)
                + C_pad * (t + hblk) * 2   # xcat temporary
                + 2 * K * t * 2            # patch temporary + slice slack
                + Cout_p * t * 4           # f32 conv temporary
                + (1 << 20))               # misc headroom

    cands = [t for t in range(hblk, hi + 1, hblk) if footprint(t) <= budget]
    if not cands:
        return hblk
    # least spatial padding first, then the largest tile (fewer grid steps).
    return min(cands, key=lambda t: (_round_up(P2, t), -t))


def staynet_forward(x, w, b, gamma, beta, *, max_tile_hw=2048):
    """Fused Conv2d(3x3, pad=1) + BatchNorm2d(training stats) + ReLU.

    x: (N, C, H, W) f32 NCHW; w: (Cout, Cin, 3, 3); gamma/beta: (Cout,).
    `b` is accepted for API parity with nn.Conv2d but is mathematically dead:
    a per-channel constant shift cancels exactly under training-mode BatchNorm.
    """
    del b  # bias cancels in (conv - mean) and does not affect the variance
    N, C, H, W_sp = x.shape
    Cout, Cin, KH, KW = w.shape
    assert (Cin, KH, KW) == (C, 3, 3)

    Wp = W_sp + 2                       # padded width, kept in the flat layout
    P2 = H * Wp                         # flat conv-output positions per image
    count = N * H * W_sp                # true BN population size
    hblk = _round_up(2 * Wp + 2, 128)   # halo block (covers the largest tap shift)

    C_pad = _round_up(C, 16)            # bf16 sublane packing
    Cout_p = _round_up(Cout, 16)
    K = 9 * C_pad

    tile = _pick_tile(P2, hblk, C_pad, Cout_p, K, max_tile_hw)
    hw_p = _round_up(P2, tile)
    xlen = hw_p + tile                  # last tile's halo block stays in range
    n_hw = hw_p // tile
    grid = (N, n_hw)
    ratio = tile // hblk

    # Zero-padded input flattened over (H+2, W+2): tap (kh, kw) of the conv is
    # a constant lane shift kh*(W+2)+kw of this array (no 9x HBM blob).
    xpad = jnp.pad(x, ((0, 0), (0, C_pad - C), (1, 1), (1, 1)))
    xflat = xpad.reshape(N, C_pad, (H + 2) * Wp)
    xflat = jnp.pad(xflat, ((0, 0), (0, 0), (0, xlen - (H + 2) * Wp)))
    xflat = xflat.astype(jnp.bfloat16)

    # Weights in tap-major, channel-minor order to match the in-kernel concat.
    wmat = jnp.transpose(w, (0, 2, 3, 1))                       # (Cout, 3, 3, Cin)
    wmat = jnp.pad(wmat, ((0, Cout_p - Cout), (0, 0), (0, 0), (0, C_pad - C)))
    wmat = wmat.reshape(Cout_p, K).astype(jnp.bfloat16)

    # Statistics mask: 1.0 on real pixels, 0.0 on the dead padded-width columns
    # and the padded tail.
    idx = np.arange(hw_p)
    mask = jnp.asarray(((idx % Wp < W_sp) & (idx < P2))
                       .astype(np.float32).reshape(1, hw_p))

    gb = jnp.stack([gamma, beta], axis=1).astype(jnp.float32)    # packed (Cout, 2)
    gb = jnp.pad(gb, ((0, Cout_p - Cout), (0, 0)))

    shifts = tuple(kh * Wp + kw for kh in range(3) for kw in range(3))

    flops = 2 * N * hw_p * Cout_p * K + 6 * N * hw_p * Cout_p
    bytes_acc = (N * C_pad * (hw_p + n_hw * hblk) * 2 + wmat.size * 2
                 + N * Cout_p * hw_p * 2 + N * Cout_p * 2 * 4 + mask.size * 4)

    # ---- pass 1: in-kernel im2col + conv + one-pass sum/sumsq ---------------
    conv_flat, stats_n = pl.pallas_call(
        functools.partial(_conv_stats_kernel, shifts=shifts),
        grid=grid,
        in_specs=[
            pl.BlockSpec((None, C_pad, tile), lambda n, h: (n, 0, h)),
            pl.BlockSpec((None, C_pad, hblk),
                         lambda n, h: (n, 0, (h + 1) * ratio)),
            pl.BlockSpec((1, tile), lambda n, h: (0, h)),
            pl.BlockSpec((Cout_p, K), lambda n, h: (0, 0)),
        ],
        out_specs=[
            pl.BlockSpec((None, Cout_p, tile), lambda n, h: (n, 0, h)),
            pl.BlockSpec((None, Cout_p, 2), lambda n, h: (n, 0, 0)),
        ],
        out_shape=[
            jax.ShapeDtypeStruct((N, Cout_p, hw_p), jnp.bfloat16),
            jax.ShapeDtypeStruct((N, Cout_p, 2), jnp.float32),
        ],
        scratch_shapes=[
            pltpu.VMEM((Cout_p, tile), jnp.float32),
            pltpu.VMEM((Cout_p, tile), jnp.float32),
        ],
        compiler_params=pltpu.CompilerParams(
            dimension_semantics=("parallel", "arbitrary")),
        cost_estimate=pl.CostEstimate(
            flops=int(flops), transcendentals=0, bytes_accessed=int(bytes_acc)),
    )(xflat, xflat, mask, wmat)

    # Tiny cross-image reduction of the per-image partial statistics.
    stats = jnp.sum(stats_n, axis=0)                              # (Cout_p, 2)

    # ---- pass 2: BN affine + ReLU (fully parallel tiles) --------------------
    out_flat = pl.pallas_call(
        functools.partial(_bn_relu_kernel, inv_count=1.0 / count),
        grid=grid,
        in_specs=[
            pl.BlockSpec((None, Cout_p, tile), lambda n, h: (n, 0, h)),
            pl.BlockSpec((Cout_p, 2), lambda n, h: (0, 0)),
            pl.BlockSpec((Cout_p, 2), lambda n, h: (0, 0)),
        ],
        out_specs=pl.BlockSpec((None, Cout_p, tile), lambda n, h: (n, 0, h)),
        out_shape=jax.ShapeDtypeStruct((N, Cout_p, hw_p), jnp.float32),
        compiler_params=pltpu.CompilerParams(
            dimension_semantics=("parallel", "parallel")),
    )(conv_flat, stats, gb)

    # Already NCHW-ordered: strip channel padding, dead width columns and tail.
    return out_flat[:, :Cout, :P2].reshape(N, Cout, H, Wp)[..., :W_sp]


def staynet_reference(x, w, b, gamma, beta):
    """Pure-JAX reference matching PyTorch semantics (training-mode BN)."""
    conv = jax.lax.conv_general_dilated(
        x, w, window_strides=(1, 1), padding="SAME",
        dimension_numbers=("NCHW", "OIHW", "NCHW"))
    conv = conv + b[None, :, None, None]
    mean = jnp.mean(conv, axis=(0, 2, 3), keepdims=True)
    var = jnp.var(conv, axis=(0, 2, 3), keepdims=True)      # biased, like BN fwd
    y = (conv - mean) * jax.lax.rsqrt(var + EPS)
    y = y * gamma[None, :, None, None] + beta[None, :, None, None]
    return jnp.maximum(y, 0.0)


if __name__ == "__main__":
    # Small deterministic problem: batch=2, in_ch=4, spatial=16x16.
    N, C, H, W = 2, 4, 16, 16
    key = jax.random.PRNGKey(0)
    kx, kw, kb, kg, kbeta = jax.random.split(key, 5)

    x = jax.random.normal(kx, (N, C, H, W), dtype=jnp.float32)
    fan_in = C * 3 * 3
    bound = 1.0 / np.sqrt(fan_in)
    w = jax.random.uniform(kw, (C, C, 3, 3), jnp.float32, -bound, bound)
    b = jax.random.uniform(kb, (C,), jnp.float32, -bound, bound)
    gamma = 1.0 + 0.1 * jax.random.normal(kg, (C,), jnp.float32)
    beta = 0.1 * jax.random.normal(kbeta, (C,), jnp.float32)

    # The kernel feeds the MXU bf16 operands and stores a bf16 conv
    # intermediate, so validate against the reference evaluated on the same
    # bf16-rounded x / w.  The full-precision conv bias is kept in the
    # reference, confirming it cancels exactly under training-mode BatchNorm
    # (the kernel drops it).
    x_q = x.astype(jnp.bfloat16).astype(jnp.float32)
    w_q = w.astype(jnp.bfloat16).astype(jnp.float32)
    ref = jax.block_until_ready(staynet_reference(x_q, w_q, b, gamma, beta))

    # max_tile_hw=128 forces several spatial tiles (multi-step stats
    # accumulation + halo handling across tile boundaries); the default
    # exercises the single-tile / flush-in-first-step path.
    for mt in (128, 2048):
        out = jax.block_until_ready(
            staynet_forward(x, w, b, gamma, beta, max_tile_hw=mt))
        assert out.shape == (N, C, H, W)
        assert np.allclose(np.asarray(out), np.asarray(ref),
                           atol=2e-2, rtol=2e-2), f"mismatch at max_tile_hw={mt}"

    print("KERNEL_OK")
</pallas_src>

<mosaic_0001>
module attributes {stable_mosaic.version = 11 : i64} {
  func.func @_conv_stats_kernel(%arg0: i32, %arg1: i32, %arg2: memref<1x16x128xbf16, #tpu.memory_space<vmem>>, %arg3: memref<1x16x128xbf16, #tpu.memory_space<vmem>>, %arg4: memref<1x128xf32, #tpu.memory_space<vmem>>, %arg5: memref<16x144xbf16, #tpu.memory_space<vmem>>, %arg6: memref<1x16x128xbf16, #tpu.memory_space<vmem>>, %arg7: memref<1x16x2xf32, #tpu.memory_space<vmem>>, %arg8: memref<16x128xf32, #tpu.memory_space<vmem>>, %arg9: memref<16x128xf32, #tpu.memory_space<vmem>>) attributes {dimension_semantics = [#tpu.dimension_semantics<parallel>, #tpu.dimension_semantics<arbitrary>], iteration_bounds = array<i64: 2, 3>, scalar_prefetch = 0 : i64, scratch_operands = 2 : i64, tpu.core_type = #tpu.core_type<tc>, window_params = [{transform_indices = @transform_0, window_bounds = array<i64: 1, 16, 128>}, {transform_indices = @transform_1, window_bounds = array<i64: 1, 16, 128>}, {transform_indices = @transform_2, window_bounds = array<i64: 1, 128>}, {pipeline_mode = #tpu.pipeline_mode<synchronous>, transform_indices = @transform_3, window_bounds = array<i64: 16, 144>}, {transform_indices = @transform_4, window_bounds = array<i64: 1, 16, 128>}, {transform_indices = @transform_5, window_bounds = array<i64: 1, 16, 2>}]} {
    %c0_i32 = arith.constant 0 : i32
    %0 = arith.cmpi eq, %arg1, %c0_i32 : i32
    %1 = arith.extui %0 : i1 to i32
    %c0_i32_0 = arith.constant 0 : i32
    %2 = arith.cmpi ne, %1, %c0_i32_0 : i32
    scf.if %2 {
      %cst_22 = arith.constant 0.000000e+00 : f32
      %37 = vector.broadcast %cst_22 : f32 to vector<16x128xf32>
      %c0_23 = arith.constant 0 : index
      %c0_24 = arith.constant 0 : index
      %38 = vector.load %arg8[%c0_23, %c0_24] : memref<16x128xf32, #tpu.memory_space<vmem>>, vector<16x128xf32>
      tpu.vector_store %arg8[%c0_23, %c0_24], %37 {strides = array<i32>} : memref<16x128xf32, #tpu.memory_space<vmem>>, vector<16x128xf32>,
      %cst_25 = arith.constant 0.000000e+00 : f32
      %39 = vector.broadcast %cst_25 : f32 to vector<16x128xf32>
      %c0_26 = arith.constant 0 : index
      %c0_27 = arith.constant 0 : index
      %40 = vector.load %arg9[%c0_26, %c0_27] : memref<16x128xf32, #tpu.memory_space<vmem>>, vector<16x128xf32>
      tpu.vector_store %arg9[%c0_26, %c0_27], %39 {strides = array<i32>} : memref<16x128xf32, #tpu.memory_space<vmem>>, vector<16x128xf32>,
    } else {
    }
    %c0 = arith.constant 0 : index
    %c0_1 = arith.constant 0 : index
    %c0_2 = arith.constant 0 : index
    %3 = vector.load %arg2[%c0, %c0_1, %c0_2] : memref<1x16x128xbf16, #tpu.memory_space<vmem>>, vector<1x16x128xbf16>
    %4 = vector.shape_cast %3 : vector<1x16x128xbf16> to vector<16x128xbf16>
    %c0_3 = arith.constant 0 : index
    %c0_4 = arith.constant 0 : index
    %c0_5 = arith.constant 0 : index
    %5 = vector.load %arg3[%c0_3, %c0_4, %c0_5] : memref<1x16x128xbf16, #tpu.memory_space<vmem>>, vector<1x16x128xbf16>
    %6 = vector.shape_cast %5 : vector<1x16x128xbf16> to vector<16x128xbf16>
    %7 = tpu.concatenate %4, %6 in 1 : vector<16x128xbf16>, vector<16x128xbf16> -> vector<16x256xbf16>
    %8 = vector.extract_strided_slice %7 {offsets = [0, 0], sizes = [16, 128], strides = [1, 1]} : vector<16x256xbf16> to vector<16x128xbf16>
    %9 = vector.extract_strided_slice %7 {offsets = [0, 1], sizes = [16, 128], strides = [1, 1]} : vector<16x256xbf16> to vector<16x128xbf16>
    %10 = vector.extract_strided_slice %7 {offsets = [0, 2], sizes = [16, 128], strides = [1, 1]} : vector<16x256xbf16> to vector<16x128xbf16>
    %11 = vector.extract_strided_slice %7 {offsets = [0, 18], sizes = [16, 128], strides = [1, 1]} : vector<16x256xbf16> to vector<16x128xbf16>
    %12 = vector.extract_strided_slice %7 {offsets = [0, 19], sizes = [16, 128], strides = [1, 1]} : vector<16x256xbf16> to vector<16x128xbf16>
    %13 = vector.extract_strided_slice %7 {offsets = [0, 20], sizes = [16, 128], strides = [1, 1]} : vector<16x256xbf16> to vector<16x128xbf16>
    %14 = vector.extract_strided_slice %7 {offsets = [0, 36], sizes = [16, 128], strides = [1, 1]} : vector<16x256xbf16> to vector<16x128xbf16>
    %15 = vector.extract_strided_slice %7 {offsets = [0, 37], sizes = [16, 128], strides = [1, 1]} : vector<16x256xbf16> to vector<16x128xbf16>
    %16 = vector.extract_strided_slice %7 {offsets = [0, 38], sizes = [16, 128], strides = [1, 1]} : vector<16x256xbf16> to vector<16x128xbf16>
    %17 = tpu.concatenate %8, %9, %10, %11, %12, %13, %14, %15, %16 in 0 : vector<16x128xbf16>, vector<16x128xbf16>, vector<16x128xbf16>, vector<16x128xbf16>, vector<16x128xbf16>, vector<16x128xbf16>, vector<16x128xbf16>, vector<16x128xbf16>, vector<16x128xbf16> -> vector<144x128xbf16>
    %c0_6 = arith.constant 0 : index
    %c0_7 = arith.constant 0 : index
    %18 = vector.load %arg5[%c0_6, %c0_7] : memref<16x144xbf16, #tpu.memory_space<vmem>>, vector<16x144xbf16>
    %cst = arith.constant dense<0.000000e+00> : vector<16x128xf32>
    %19 = tpu.matmul %18, %17, %cst {dimension_numbers = #tpu.dot_dimension_numbers<[1], [0], [0], [1], [0, 0, 1, 1], [], []>} : vector<16x144xbf16>, vector<144x128xbf16>, vector<16x128xf32> -> vector<16x128xf32>
    %20 = arith.truncf %19 : vector<16x128xf32> to vector<16x128xbf16>
    %c0_8 = arith.constant 0 : index
    %c0_9 = arith.constant 0 : index
    %c0_10 = arith.constant 0 : index
    %21 = vector.load %arg6[%c0_8, %c0_9, %c0_10] : memref<1x16x128xbf16, #tpu.memory_space<vmem>>, vector<1x16x128xbf16>
    %22 = vector.shape_cast %21 : vector<1x16x128xbf16> to vector<16x128xbf16>
    %23 = vector.shape_cast %20 : vector<16x128xbf16> to vector<1x16x128xbf16>
    tpu.vector_store %arg6[%c0_8, %c0_9, %c0_10], %23 {strides = array<i32>} : memref<1x16x128xbf16, #tpu.memory_space<vmem>>, vector<1x16x128xbf16>,
    %c0_11 = arith.constant 0 : index
    %c0_12 = arith.constant 0 : index
    %24 = vector.load %arg4[%c0_11, %c0_12] : memref<1x128xf32, #tpu.memory_space<vmem>>, vector<1x128xf32>
    %25 = vector.broadcast %24 : vector<1x128xf32> to vector<16x128xf32>
    %26 = arith.mulf %19, %25 : vector<16x128xf32>
    %c0_13 = arith.constant 0 : index
    %c0_14 = arith.constant 0 : index
    %27 = vector.load %arg8[%c0_13, %c0_14] : memref<16x128xf32, #tpu.memory_space<vmem>>, vector<16x128xf32>
    %28 = arith.addf %27, %26 : vector<16x128xf32>
    %c0_15 = arith.constant 0 : index
    %c0_16 = arith.constant 0 : index
    %29 = vector.load %arg8[%c0_15, %c0_16] : memref<16x128xf32, #tpu.memory_space<vmem>>, vector<16x128xf32>
    tpu.vector_store %arg8[%c0_15, %c0_16], %28 {strides = array<i32>} : memref<16x128xf32, #tpu.memory_space<vmem>>, vector<16x128xf32>,
    %c0_17 = arith.constant 0 : index
    %c0_18 = arith.constant 0 : index
    %30 = vector.load %arg9[%c0_17, %c0_18] : memref<16x128xf32, #tpu.memory_space<vmem>>, vector<16x128xf32>
    %31 = arith.mulf %26, %26 : vector<16x128xf32>
    %32 = arith.addf %30, %31 : vector<16x128xf32>
    %c0_19 = arith.constant 0 : index
    %c0_20 = arith.constant 0 : index
    %33 = vector.load %arg9[%c0_19, %c0_20] : memref<16x128xf32, #tpu.memory_space<vmem>>, vector<16x128xf32>
    tpu.vector_store %arg9[%c0_19, %c0_20], %32 {strides = array<i32>} : memref<16x128xf32, #tpu.memory_space<vmem>>, vector<16x128xf32>,
    %c2_i32 = arith.constant 2 : i32
    %34 = arith.cmpi eq, %arg1, %c2_i32 : i32
    %35 = arith.extui %34 : i1 to i32
    %c0_i32_21 = arith.constant 0 : i32
    %36 = arith.cmpi ne, %35, %c0_i32_21 : i32
    scf.if %36 {
      %cst_22 = arith.constant 1.000000e+00 : f32
      %37 = vector.broadcast %cst_22 : f32 to vector<128x1xf32>
      %c0_23 = arith.constant 0 : index
      %c0_24 = arith.constant 0 : index
      %38 = vector.load %arg8[%c0_23, %c0_24] : memref<16x128xf32, #tpu.memory_space<vmem>>, vector<16x128xf32>
      %cst_25 = arith.constant dense<0.000000e+00> : vector<16x1xf32>
      %39 = tpu.matmul %38, %37, %cst_25 {dimension_numbers = #tpu.dot_dimension_numbers<[1], [0], [0], [1], [0, 0, 1, 1], [], []>} : vector<16x128xf32>, vector<128x1xf32>, vector<16x1xf32> -> vector<16x1xf32>
      %c0_26 = arith.constant 0 : index
      %c0_27 = arith.constant 0 : index
      %40 = vector.load %arg9[%c0_26, %c0_27] : memref<16x128xf32, #tpu.memory_space<vmem>>, vector<16x128xf32>
      %cst_28 = arith.constant dense<0.000000e+00> : vector<16x1xf32>
      %41 = tpu.matmul %40, %37, %cst_28 {dimension_numbers = #tpu.dot_dimension_numbers<[1], [0], [0], [1], [0, 0, 1, 1], [], []>} : vector<16x128xf32>, vector<128x1xf32>, vector<16x1xf32> -> vector<16x1xf32>
      %42 = tpu.concatenate %39, %41 in 1 : vector<16x1xf32>, vector<16x1xf32> -> vector<16x2xf32>
      %c0_29 = arith.constant 0 : index
      %c0_30 = arith.constant 0 : index
      %c0_31 = arith.constant 0 : index
      %43 = vector.load %arg7[%c0_29, %c0_30, %c0_31] : memref<1x16x2xf32, #tpu.memory_space<vmem>>, vector<1x16x2xf32>
      %44 = vector.shape_cast %43 : vector<1x16x2xf32> to vector<16x2xf32>
      %45 = vector.shape_cast %42 : vector<16x2xf32> to vector<1x16x2xf32>
      tpu.vector_store %arg7[%c0_29, %c0_30, %c0_31], %45 {strides = array<i32>} : memref<1x16x2xf32, #tpu.memory_space<vmem>>, vector<1x16x2xf32>,
    } else {
    }
    return
  }
  func.func @transform_0(%arg0: i32, %arg1: i32) -> (i32, i32, i32) {
    %c0_i32 = arith.constant 0 : i32
    %c0_i32_0 = arith.constant 0 : i32
    return %arg0, %c0_i32, %arg1 : i32, i32, i32
  }
  func.func @transform_1(%arg0: i32, %arg1: i32) -> (i32, i32, i32) {
    %c1_i32 = arith.constant 1 : i32
    %0 = arith.addi %arg1, %c1_i32 : i32
    %c1_i32_0 = arith.constant 1 : i32
    %1 = arith.muli %0, %c1_i32_0 : i32
    %c0_i32 = arith.constant 0 : i32
    %c0_i32_1 = arith.constant 0 : i32
    return %arg0, %c0_i32, %1 : i32, i32, i32
  }
  func.func @transform_2(%arg0: i32, %arg1: i32) -> (i32, i32) {
    %c0_i32 = arith.constant 0 : i32
    %c0_i32_0 = arith.constant 0 : i32
    return %c0_i32, %arg1 : i32, i32
  }
  func.func @transform_3(%arg0: i32, %arg1: i32) -> (i32, i32) {
    %c0_i32 = arith.constant 0 : i32
    %c0_i32_0 = arith.constant 0 : i32
    %c0_i32_1 = arith.constant 0 : i32
    return %c0_i32, %c0_i32_0 : i32, i32
  }
  func.func @transform_4(%arg0: i32, %arg1: i32) -> (i32, i32, i32) {
    %c0_i32 = arith.constant 0 : i32
    %c0_i32_0 = arith.constant 0 : i32
    return %arg0, %c0_i32, %arg1 : i32, i32, i32
  }
  func.func @transform_5(%arg0: i32, %arg1: i32) -> (i32, i32, i32) {
    %c0_i32 = arith.constant 0 : i32
    %c0_i32_0 = arith.constant 0 : i32
    %c0_i32_1 = arith.constant 0 : i32
    return %arg0, %c0_i32, %c0_i32_0 : i32, i32, i32
  }
}

</mosaic_0001>

<bundles_post_ra>
// kernel: tpu_custom_call.1
= control target key start
LH: loop header
LB: loop body
LE: loop exit
PB: predicated region body
PF: predicated region fallthrough
CT: control target
= control target key end

     0   :  { %s1813_s0 = inlined_call_operand.hbm [shape: bf16[2,16,512], index: 0, kind: input, shape index: {}]   ;;  %s1814_s1 = inlined_call_operand.hbm [shape: bf16[2,16,512], index: 1, kind: input, shape index: {}]   ;;  %s1815_s2 = inlined_call_operand.vmem [shape: f32[1,384], index: 2, kind: input, shape index: {}]   ;;  %s1816_s3 = inlined_call_operand.hbm [shape: bf16[16,144], index: 3, kind: input, shape index: {}]   ;;  %s1817_s4 = inlined_call_operand.hbm [shape: bf16[2,16,384], index: 4, kind: output, shape index: {0}]   ;;  %s1818_s5 = inlined_call_operand.vmem [shape: f32[2,16,2], index: 5, kind: output, shape index: {1}]  }
   0x1   :  { %1837 = sst [smem:[#allocation25_spill]] %s1815_s2 }
   0x2   :  { %1838 = sst [smem:[#allocation26_spill]] %s1816_s3 }
   0x3   :  { %1839 = sst [smem:[#allocation27_spill]] %s1817_s4 }
   0x4   :  { %1840 = sst [smem:[#allocation28_spill]] %s1818_s5 }
   0x5   :  { %11 = vsyncpa [#allocation5], 0 }
   0x6   :  { %13 = vsyncpa [#allocation5 + $0x1], 0 }
   0x7   :  { %14 = vsyncpa [#allocation8], 0 }
   0x8   :  { %16 = vsyncpa [#allocation8 + $0x1], 0 }
   0x9   :  { %17 = vsyncpa [#allocation6], 0 }
   0xa   :  { %19 = vsyncpa [#allocation6 + $0x1], 0  ;;  %s1426_s18 = smov 0   ;;  %s1428_s19 = smov 0  }
   0xb   :  { %s1430_s20 = smov 0   ;;  %s1432_s21 = smov 0  }
   0xc   :  { %s1434_s22 = smov 0   ;;  %s1436_s23 = smov 0  }
   0xd   :  { %s1438_s24 = smov 0   ;;  %s1440_s25 = smov 0  }
   0xe   :  { %s1442_s26 = smov 0   ;;  %s1444_s27 = smov 0  }
   0xf   :  { %s1446_s28 = smov 0  }
  0x10 LB: > { %1841 = sst [smem:[#allocation15_spill]] %s1334_s19  ;;  %s1480_s29 = sadd.s32 4294967295, %s1370_s28   ;;  %s1370_s28 = sphi %s1446_s28, %s25_s28   ;;  %s1366_s27 = sphi %s1444_s27, %s1894_s27   ;;  %s1362_s26 = sphi %s1442_s26, %s1893_s26   ;;  %s1358_s25 = sphi %s1440_s25, %s1892_s25   ;;  %s1354_s24 = sphi %s1438_s24, %s1891_s24   ;;  %s1350_s23 = sphi %s1436_s23, %s1890_s23   ;;  %s1346_s22 = sphi %s1434_s22, %s1889_s22   ;;  %s1342_s21 = sphi %s1432_s21, %s1888_s21   ;;  %s1338_s20 = sphi %s1430_s20, %s1887_s20   ;;  %s1334_s19 = sphi %s1428_s19, %s1886_s19   ;;  %s1330_s18 = sphi %s1426_s18, %s1884_s18  }
  0x11   : > { %1842 = sst [smem:[#allocation16_spill]] %s1342_s21  ;;  %s870_s30 = sadd.s32 4294967294, %s1370_s28  }
  0x12   : > { %1843 = sst [smem:[#allocation17_spill]] %s1354_s24  ;;  %p1819_p0 = scmp.eq.s32.totalorder %s1370_s28, 0 }
  0x13   : > { %1844 = sst [smem:[#allocation18_spill]] %s1358_s25  ;;  %p59_p1 = scmp.ne.s32.totalorder %s1346_s22, %s1342_s21 }
  0x14   : > { %1845 = sst [smem:[#allocation19_spill]] %s1480_s29  ;;  %p1821_p2 = scmp.eq.s32.totalorder %s1480_s29, 0 }
  0x15   : > { %p83_p3 = scmp.ne.s32.totalorder %s1338_s20, %s1334_s19  ;;  %p89_p4 = scmp.ne.s32.totalorder %s1334_s19, %s1330_s18 }
  0x16   : > { %p1493_p6 = por %p1821_p2, %p59_p1  ;;  %p168_p9 = scmp.eq.s32.totalorder %s870_s30, 5 }
  0x17   : > { %p1499_p7 = por %p83_p3, %p1819_p0  ;;  %p1505_p8 = por %p89_p4, %p1821_p2 }
  0x18   : > { %s1846_s6 = scalar_select %p1493_p6, 1, 0 }
  0x19   : > { %s1849_s8 = scalar_select %p1505_p8, 1, 0 }
  0x1a   : > { %1847 = sst [smem:[#allocation20_spill]] %s1846_s6  ;;  %p871_p10 = scmp.ge.s32.totalorder %s1370_s28, 1 }
  0x1b   : > { %1850 = sst [smem:[#allocation21_spill]] %s1849_s8  ;;  %p201_p11 = scmp.lt.s32.totalorder %s1370_s28, 7 }
  0x1c   : > { %p1511_p12 = por %p168_p9, %p59_p1  ;;  %s1372_s11 = smov [#allocation9]  }
  0x1d   : > { %p1515_p13 = pnand %p871_p10, %p201_p11  ;;  %s213_s12 = sshll.u32 %s1372_s11, 4  ;;  %s214_s12 = int_to_ptr.vmem [resolvable:$true] %s213_s12 }
  0x1e   : > { %s1851_s9 = scalar_select %p1511_p12, 1, 0 }
  0x1f   : > { %p1026_p3 = pneg %p1515_p13  ;;  %p1042_p1 = scmp.lt.s32.totalorder %s1370_s28, 6 }
  0x20   : > { %1852 = sst [smem:[#allocation22_spill]] %s1851_s9  ;;  %s1170_s15 = scalar_lea.vmem %s214_s12, 256 }
  0x21   : > { %p1523_p4 = pnand %p1026_p3, %p1821_p2  ;;  %p1532_p9 = pnand %p1042_p1, %p1499_p7 }
  0x22   : > { %p1171_p11 = scmp.ne.s32.totalorder %s214_s12, %s1170_s15  ;;  %p1178_p12 = scmp.lt.s32.totalorder %s214_s12, %s214_s12 }
  0x23   : > { %p1161_p10 = pneg %p1523_p4  ;;  %p1179_p8 = scmp.lt.s32.totalorder %s1170_s15, %s1170_s15 }
  0x25   : > { %p1173_p5 = pnand %p1171_p11, %p1161_p10  ;;  %p1180_p3 = por %p1179_p8, %p1178_p12 }
  0x27   : > { %p1174_p0 = pneg %p1173_p5 }
  0x29   : > { %p1181_p2 = pnand %p1180_p3, %p1174_p0 }
  0x2b   : > { %1184 = shalt.err (!%p1181_p2)
}
  0x2c   : > { %s1373_s16 = smov 128   ;;  %s1374_s17 = smov 8  }
  0x2d   : > { %s1856_s3 = sld [smem:[#allocation26_spill]]  ;;  %s34_s7 = sadd.s32 1, %s1362_s26 }
  0x2e   : > { %p35_p0 = scmp.ge.s32.totalorder %s34_s7, 3  ;;  %s37_s11 = sadd.s32 1, %s1366_s27 }
  0x2f   : > { %s46_s15 = sadd.s32 1, %s1350_s23  ;;  %p53_p2 = scmp.ne.s32.totalorder %s1350_s23, %s1346_s22 }
  0x30   : > { %s1548_s9 = scalar_select %p35_p0, 0, %s34_s7  }
  0x31   : > { %s1896_s11 = smov (!%p35_p0, %s37_s11), %s1366_s27  ;;  %p1858_p5 = scmp.eq.s32.totalorder %s1370_s28, 0 }
  0x32   : > { %1857 = sst [smem:[#allocation23_spill]] %s1548_s9  ;;  %s42_s21 = ssub.s32 %s1362_s26, %s1548_s9 }
  0x33   : > { %1029 = dma.hbm_to_vmem [thread:$0]  (!%p1523_p4), %s1856_s3, 256, %s214_s12, [#allocation8], %s1373_s16, %s1373_s16, %s1374_s17  }
  0x34   : > { %p1555_p7 = por %p1858_p5, %p53_p2  ;;  %p39_p8 = scmp.ge.s32.totalorder %s1896_s11, 2 }
  0x35   : > { %s70_s12 = sadd.s32 1, %s1548_s9  ;;  %s76_s17 = sadd.s32 1, %s1338_s20 }
  0x36   : > { %s72_s16 = ssub.s32 %s34_s7, %s70_s12  ;;  %s1898_s11 = smov (%p39_p8, %s1896_s11), 0 }
  0x37   : > { %p1860_p12 = scmp.eq.s32.totalorder %s1480_s29, 5  ;;  %s227_s30 = sand.u32 1, %s1350_s23  }
  0x38   : > { %s41_s3 = ssub.s32 %s1366_s27, %s1898_s11  ;;  %s874_s2 = sshll.u32 %s227_s30, 3 }
  0x39   : > { %p1565_p4 = por %p1860_p12, %p53_p2  ;;  %s43_s4 = sor.u32 %s42_s21, %s41_s3 }
  0x3a   : > { %s73_s5 = sor.u32 %s72_s16, %s41_s3  ;;  %p44_p10 = scmp.eq.s32.totalorder %s43_s4, 0 }
  0x3b   : > { %s1861_s18 = scalar_select %p1565_p4, 1, 0 }
  0x3c   : > { %p74_p11 = scmp.eq.s32.totalorder %s73_s5, 0  ;;  %s875_s9 = sshll.u32 %s1366_s27, 3 }
  0x3d   : > { %1862 = sst [smem:[#allocation24_spill]] %s1861_s18  ;;  %s236_s25 = sadd.s32 %s1362_s26, %s875_s9 }
  0x3e   : > { %s1574_s7 = scalar_select %p44_p10, %s1350_s23, %s46_s15  }
  0x3f   : > { %s1577_s12 = scalar_select %p74_p11, %s1338_s20, %s76_s17  }
  0x40   : > { %s876_s24 = sshll.u32 %s236_s25, 6  ;;  %s231_s8 = scalar_lea.vmem [#allocation4], %s874_s2 }
  0x41   : > { %s239_s19 = sshll.u32 %s231_s8, 4  ;;  %s238_s6 = scalar_lea.hbm %s1813_s0, %s876_s24  ;;  %s240_s19 = int_to_ptr.vmem [resolvable:$true] %s239_s19 }
  0x42   : > { %p1587_p3 = pnand %p1042_p1, %p1555_p7  ;;  %s1594_s21 = scalar_lea.hbm %s1814_s1, %s876_s24 }
  0x43   : > { %s228_s25 = scalar_lea.sflag [#allocation5], %s227_s30  ;;  %s1198_s2 = scalar_lea.vmem %s240_s19, 128 }
  0x44   : > { %p1187_p0 = pneg %p1587_p3  ;;  %p1199_p2 = scmp.ne.s32.totalorder %s240_s19, %s1198_s2 }
  0x45   : > { %s1375_s29 = smov [#allocation4]  }
  0x46   : > { %p1201_p5 = pnand %p1199_p2, %p1187_p0  ;;  %s1203_s8 = sshll.u32 %s1375_s29, 4  ;;  %s1204_s8 = int_to_ptr.vmem [resolvable:$false] %s1203_s8 }
  0x47   : > { %s1205_s9 = scalar_lea.vmem %s1204_s8, 256  ;;  %p1206_p1 = scmp.lt.s32.totalorder %s240_s19, %s1204_s8 }
  0x48   : > { %p1202_p8 = pneg %p1201_p5  ;;  %p1207_p7 = scmp.lt.s32.totalorder %s1205_s9, %s1198_s2 }
  0x4a   : > { %p1208_p12 = por %p1207_p7, %p1206_p1 }
  0x4c   : > { %p1209_p10 = pnand %p1208_p12, %p1202_p8 }
  0x4e   : > { %1212 = shalt.err (!%p1209_p10)
}
  0x4f   : > { %s1376_s15 = smov 256   ;;  %s1377_s24 = smov 64  }
  0x50   : > { %s1378_s13 = smov 4   ;;  %s249_s16 = sand.u32 1, %s1370_s28  }
  0x51   : > { %1033 = dma.hbm_to_vmem [thread:$0]  (!%p1587_p3), %s238_s6, 128, %s240_s19, %s228_s25, %s1376_s15, %s1377_s24, %s1378_s13  }
  0x52   : > { %s251_s17 = sand.u32 1, %s1338_s20   ;;  %s764_s18 = scalar_lea.hbm %s1594_s21, 64 }
  0x53   : > { %s877_s30 = sshll.u32 %s251_s17, 3  ;;  %s250_s2 = scalar_lea.sflag [#allocation8], %s249_s16 }
  0x54   : > { %s253_s4 = scalar_lea.vmem [#allocation7], %s877_s30  ;;  %p1215_p11 = pneg %p1532_p9 }
  0x55   : > { %s262_s5 = sshll.u32 %s253_s4, 4  ;;  %s1379_s8 = smov [#allocation7]   ;;  %s263_s5 = int_to_ptr.vmem [resolvable:$true] %s262_s5 }
  0x56   : > { %s1226_s29 = scalar_lea.vmem %s263_s5, 128  ;;  %s1231_s9 = sshll.u32 %s1379_s8, 4  ;;  %s1232_s9 = int_to_ptr.vmem [resolvable:$false] %s1231_s9 }
  0x57   : > { %p1227_p0 = scmp.ne.s32.totalorder %s263_s5, %s1226_s29  ;;  %s1233_s3 = scalar_lea.vmem %s1232_s9, 256 }
  0x58   : > { %p1234_p8 = scmp.lt.s32.totalorder %s263_s5, %s1232_s9  ;;  %p1235_p3 = scmp.lt.s32.totalorder %s1233_s3, %s1226_s29 }
  0x59   : > { %p1229_p2 = pnand %p1227_p0, %p1215_p11 }
  0x5a   : > { %p1236_p1 = por %p1235_p3, %p1234_p8 }
  0x5b   : > { %p1230_p5 = pneg %p1229_p2 }
  0x5d   : > { %p1237_p7 = pnand %p1236_p1, %p1230_p5 }
  0x5f   : > { %1240 = shalt.err (!%p1237_p7)
}
  0x60   : > { %1036 = dma.hbm_to_vmem [thread:$0]  (!%p1532_p9), %s764_s18, 128, %s263_s5, %s250_s2, %s1376_s15, %s1377_s24, %s1378_s13  }
  0x61   : > { %280 = sbr.rel (%p1515_p13) target bundleno = 870 (0x366), region = 36  ;;  %s1614_s6 = sand.u32 (!%p1515_p13), 1, %s1346_s22  }
  0x62   : > { %s881_s21 = sshll.u32 (!%p1515_p13), %s1614_s6, 3  ;;  %s283_s25 = scalar_lea.sflag (!%p1515_p13), [#allocation5], %s1614_s6 }
  0x63   : > { %s286_s16 = scalar_lea.vmem (!%p1515_p13), [#allocation4], %s881_s21 }
  0x66   : > { %1313 = dma.done.wait (%p1493_p6), %s283_s25, 128  }
  0x67   : > { %1315 = vsyncadd (%p1493_p6), %s283_s25, 4294967168  ;;  %s1865_s14 = sld [smem:[#allocation19_spill]] }
  0x68   : > { %s1866_s17 = sld [smem:[#allocation15_spill]] }
  0x69   : > { %s1867_s15 = sld [smem:[#allocation21_spill]] }
  0x6d   : > { %s291_s24 = sand.u32 1, %s1865_s14  }
  0x6e   : > { %s293_s10 = sand.u32 1, %s1866_s17   ;;  %s292_s18 = scalar_lea.sflag [#allocation8], %s291_s24 }
  0x6f   : > { %s882_s13 = sshll.u32 %s293_s10, 3  ;;  %p1868_p13 = scmp.ne.s32.totalorder %s1867_s15, 0 }
  0x70   : > { %s295_s30 = scalar_lea.vmem [#allocation7], %s882_s13 }
  0x71   : > { %1317 = dma.done.wait (%p1868_p13), %s292_s18, 128  }
  0x72   : > { %1319 = vsyncadd (%p1868_p13), %s292_s18, 4294967168  ;;  %p1869_p9 = scmp.eq.s32.totalorder %s1865_s14, 0 }
  0x74   : > { %1321 = dma.done.wait (%p1869_p9), [#allocation8], 256   ;;  %p1870_p12 = pmov %p1869_p9 }
  0x75   : > { %s1871_s4 = sld [smem:[#allocation17_spill]]  ;;  %s1647_s24 = scalar_lea.vmem [#allocation10], %s881_s21 }
  0x76   : > { %1323 = vsyncadd (%p1870_p12), [#allocation8], 4294967040  ;;  %s1872_s5 = sld [smem:[#allocation18_spill]] }
  0x77   : > { %s1873_s9 = sld [smem:[#allocation25_spill]] }
  0x78   : > { %s1874_s15 = sld [smem:[#allocation28_spill]] }
  0x7b   : > { %p340_p6 = scmp.lt.s32.totalorder %s1871_s4, 2  ;;  %p887_p11 = scmp.ne.s32.totalorder %s1871_s4, 0 }
  0x7c   : > { %p343_p10 = scmp.lt.s32.totalorder %s1872_s5, 1 }
  0x7d   : > { %s1635_s2 = scalar_select %p340_p6, %s1871_s4, 2 }
  0x7e   : > { %s1900_s5 = smov (!%p343_p10, %s1872_s5), 1  ;;  %352 = sbr.rel (%p887_p11) target bundleno = 134 (0x86), region = 52 }
  0x7f   : > { %s342_s3 = scalar_lea.vmem %s1873_s9, %s1635_s2  ;;  %s901_s19 = sshll.u32 %s1900_s5, 4 }
  0x80   : > { %s1645_s14 = scalar_lea.vmem %s1874_s15, %s901_s19 }
  0x83   : > { %v1380_v0 = vmov 0.0  }
  0x84   : > { %353 = vst [vmem:[#allocation2] sm:$0xff] %v1380_v0  ;;  %354 = vst [vmem:[#allocation2 + $0x8] sm:$0xff] %v1380_v0 }
  0x85   : > { %355 = vst [vmem:[#allocation3 + $0x8] sm:$0xff] %v1380_v0  ;;  %356 = vst [vmem:[#allocation3] sm:$0xff] %v1380_v0 }
  0x86 PF: > { %v1650_v1 = vld [vmem:[%s286_s16] sm:$0xff]   ;;  %s1381_s10 = smov 92   ;;  %s1382_s13 = smov 91   ;;  %v1155_v2 = vld [vmem:[%s295_s30] sm:$0xff]   ;;  %v1383_v3 = vmov 0   ;;  %vm439_vm0 = vcmask 130048  }
  0x87   : > { %407 = vrot.lane.b32.xlu1 %v1650_v1, %s1381_s10  ;;  %414 = vrot.lane.b32.xlu0 %v1650_v1, %s1382_s13  ;;  %s1384_s21 = smov 108   ;;  %s1385_s18 = smov 109   ;;  %v1158_v4 = vld [vmem:[#allocation9 + $0x4] ss:$8 sps:$4 sm:$0xff]   ;;  %vm418_vm1 = vcmask 744448   ;;  %vm411_vm2 = vcmask 752640  }
  0x88   : > { %443 = vmatprep.subr.bf16.mxu0 %v1383_v3  ;;  %s1386_s16 = smov 110   ;;  %s1387_s4 = smov 126   ;;  %892 = vmatprep.mubr.msk.bf16.mxu0 %vm439_vm0, %v1158_v4  ;;  %vm404_vm3 = vcmask 883712   ;;  %vm397_vm4 = vcmask 891904   ;;  %vm390_vm5 = vcmask 900096   ;;  %vm383_vm6 = vcmask 1031168  }
  0x89   : > { %s1388_s30 = smov 127   ;;  %s1389_s5 = smov 90   ;;  %vm376_vm7 = vcmask 1039360   ;;  %vm425_vm8 = vcmask 736256   ;;  %v1156_v29 = vld [vmem:[#allocation9] ss:$8 sps:$4 sm:$0xff]  }
  0x8a   : > { %v895_v30 = vld [vmem:[%s342_s3] ss:$0 sm:$0xff]  ;;  %s1876_s2 = sld [smem:[#allocation17_spill]] }
  0x8b   : > { %409 = vrot.lane.b32.xlu1 %v1155_v2, %s1381_s10  ;;  %416 = vrot.lane.b32.xlu0 %v1155_v2, %s1382_s13  ;;  %v503_v32 = vld [vmem:[#allocation2] sm:$0xff]  ;;  %v504_v39 = vld [vmem:[#allocation2 + $0x8] sm:$0xff] }
  0x8c   : > { %v509_v34 = vld [vmem:[#allocation3 + $0x8] sm:$0xff]  ;;  %v510_v43 = vld [vmem:[#allocation3] sm:$0xff] }
  0x8f   : > { %402 = vrot.lane.b32.xlu1 %v1155_v2, %s1384_s21  ;;  %400 = vrot.lane.b32.xlu0 %v1650_v1, %s1384_s21 }
  0x90   : > { %p896_p0 = scmp.ne.s32.totalorder %s1876_s2, 2 }
  0x91   : > { %s1391_s3 = smov (!%p896_p0), 1  }
  0x93   : > { %395 = vrot.lane.b32.xlu1 %v1155_v2, %s1385_s18  ;;  %393 = vrot.lane.b32.xlu0 %v1650_v1, %s1385_s18 }
  0x97   : > { %388 = vrot.lane.b32.xlu1 %v1155_v2, %s1386_s16  ;;  %386 = vrot.lane.b32.xlu0 %v1650_v1, %s1386_s16 }
  0x9b   : > { %381 = vrot.lane.b32.xlu1 %v1155_v2, %s1387_s4  ;;  %379 = vrot.lane.b32.xlu0 %v1650_v1, %s1387_s4 }
  0x9f   : > { %374 = vrot.lane.b32.xlu1 %v1155_v2, %s1388_s30  ;;  %372 = vrot.lane.b32.xlu0 %v1650_v1, %s1388_s30 }
  0xa3   : > { %423 = vrot.lane.b32.xlu1 %v1155_v2, %s1389_s5  ;;  %421 = vrot.lane.b32.xlu0 %v1650_v1, %s1389_s5 }
  0xf9   : > { %v408_v5 = vpop.permute.xlu1 %407  ;;  %v415_v6 = vpop.permute.xlu0 %414 }
  0xfd   : > { %v410_v7 = vpop.permute.xlu1 %409  ;;  %v417_v8 = vpop.permute.xlu0 %416 }
  0xfe   : > { %v419_v9 = vsel %vm418_vm1, %v415_v6, %v417_v8  ;;  %v412_v12 = vsel %vm411_vm2, %v408_v5, %v410_v7 }
  0xff   : > { %444 = vmatpush1.bf16.msra.mxu0 %v419_v9 }
 0x100   : > { %445 = vmatprep.subr.bf16.mxu0 %v1383_v3 }
 0x101   : > { %v403_v10 = vpop.permute.xlu1 %402  ;;  %v401_v11 = vpop.permute.xlu0 %400 }
 0x102   : > { %v405_v13 = vsel %vm404_vm3, %v401_v11, %v403_v10 }
 0x103   : > { %446 = vmatpush1.bf16.msra.mxu0 %v412_v12 }
 0x104   : > { %447 = vmatprep.subr.bf16.mxu0 %v1383_v3 }
 0x105   : > { %v396_v14 = vpop.permute.xlu1 %395  ;;  %v394_v15 = vpop.permute.xlu0 %393 }
 0x106   : > { %v398_v16 = vsel %vm397_vm4, %v394_v15, %v396_v14 }
 0x107   : > { %448 = vmatpush1.bf16.msra.mxu0 %v405_v13 }
 0x108   : > { %449 = vmatprep.subr.bf16.mxu0 %v1383_v3 }
 0x109   : > { %v389_v17 = vpop.permute.xlu1 %388  ;;  %v387_v18 = vpop.permute.xlu0 %386 }
 0x10a   : > { %v391_v19 = vsel %vm390_vm5, %v387_v18, %v389_v17 }
 0x10b   : > { %450 = vmatpush1.bf16.msra.mxu0 %v398_v16 }
 0x10c   : > { %451 = vmatprep.subr.bf16.mxu0 %v1383_v3 }
 0x10d   : > { %v382_v20 = vpop.permute.xlu1 %381  ;;  %v380_v21 = vpop.permute.xlu0 %379 }
 0x10e   : > { %v384_v22 = vsel %vm383_vm6, %v380_v21, %v382_v20 }
 0x10f   : > { %452 = vmatpush1.bf16.msra.mxu0 %v391_v19 }
 0x110   : > { %453 = vmatprep.subr.bf16.mxu0 %v1383_v3 }
 0x111   : > { %v375_v23 = vpop.permute.xlu1 %374  ;;  %v373_v24 = vpop.permute.xlu0 %372 }
 0x112   : > { %v377_v25 = vsel %vm376_vm7, %v373_v24, %v375_v23 }
 0x113   : > { %454 = vmatpush1.bf16.msra.mxu0 %v384_v22 }
 0x114   : > { %455 = vmatprep.subr.bf16.mxu0 %v1383_v3 }
 0x115   : > { %v424_v26 = vpop.permute.xlu1 %423  ;;  %v422_v27 = vpop.permute.xlu0 %421 }
 0x116   : > { %v426_v28 = vsel %vm425_vm8, %v422_v27, %v424_v26 }
 0x117   : > { %456 = vmatpush1.bf16.msra.mxu0 %v377_v25 }
 0x118   : > { %457 = vmatprep.subr.bf16.mxu0 %v1383_v3 }
 0x11b   : > { %458 = vmatpush1.bf16.msra.mxu0 %v1650_v1 }
 0x11c   : > { %473 = vmatprep.subr.bf16.mxu0 %v1383_v3 }
 0x11f   : > { %474 = vmatpush2.bf16.msra.mxu0 %v426_v28 }
 0x122   : > { %476 = vmatmul.mubr.bf16.vlgmr.msra.gmra.mxu0 %v1156_v29 }
 0x1e2   : > { %v477_v31 = vpop.f32.mrf.mxu0 }
 0x1e3   : > { %v501_v33 = vmul.f32 %v895_v30, %v477_v31 }
 0x1e4   : > { %v479_v35 = vpop.f32.mrf.mxu0 }
 0x1e5   : > { %v505_v36 = vadd.f32 %v503_v32, %v501_v33  ;;  %v511_v37 = vmul.f32 %v501_v33, %v501_v33 }
 0x1e6   : > { %v480_v38 = vpop.f32.mrf.mxu0 }
 0x1e7   : > { %507 = vst [vmem:[#allocation2] sm:$0xff] %v505_v36  ;;  %v513_v40 = vadd.f32 %v511_v37, %v509_v34  ;;  %v907_v41 = vpack.c.bf16 %v480_v38, %v477_v31  ;;  %v502_v42 = vmul.f32 %v895_v30, %v480_v38 }
 0x1e8   : > { %v482_v44 = vpop.f32.mrf.mxu0 }
 0x1e9   : > { %515 = vst [vmem:[#allocation3 + $0x8] sm:$0xff] %v513_v40  ;;  %908 = vst [vmem:[%s1647_s24] sm:$0xff] %v907_v41   ;;  %v506_v45 = vadd.f32 %v504_v39, %v502_v42  ;;  %v512_v46 = vmul.f32 %v502_v42, %v502_v42  ;;  %520 = sbr.rel (%p896_p0) target bundleno = 843 (0x34b), region = 56 }
 0x1eb   : > { %508 = vst [vmem:[#allocation2 + $0x8] sm:$0xff] %v506_v45  ;;  %v514_v47 = vadd.f32 %v512_v46, %v510_v43 }
 0x1ed   : > { %516 = vst [vmem:[#allocation3] sm:$0xff] %v514_v47 }
 0x1ee   : > { %v1390_v49 = vmov 1.0   ;;  %v521_v51 = vld [vmem:[#allocation2] sm:$0xff]  ;;  %vm683_vm9 = vcmask 7168   ;;  %vm686_vm10 = vcmask 15360  }
 0x1ef   : > { %980 = vmatprep.subr.mxu1 %v1390_v49  ;;  %945 = vmatprep.subr.mxu0 %v1390_v49 }
 0x1f0   : > { %v598_v48 = vld [vmem:[#allocation3 + $0x8] sm:$0xff]  ;;  %981 = vmatpush3.msra.mxu1 %v1390_v49  ;;  %946 = vmatpush3.msra.mxu0 %v1390_v49 }
 0x1f1   : > { %1012 = vmatprep.mubr.f32.mxu1 %v598_v48  ;;  %982 = vmatprep.subr.mxu1 %v1390_v49 }
 0x1f2   : > { %983 = vmatpush3.msra.mxu1 %v1390_v49  ;;  %947 = vmatprep.subr.mxu0 %v1390_v49  ;;  %v522_v52 = vld [vmem:[#allocation2 + $0x8] sm:$0xff] }
 0x1f3   : > { %984 = vmatprep.subr.mxu1 %v1390_v49  ;;  %948 = vmatpush3.msra.mxu0 %v1390_v49 }
 0x1f4   : > { %985 = vmatpush3.msra.mxu1 %v1390_v49  ;;  %949 = vmatprep.subr.mxu0 %v1390_v49  ;;  %v599_v50 = vld [vmem:[#allocation3] sm:$0xff] }
 0x1f5   : > { %986 = vmatprep.subr.mxu1 %v1390_v49  ;;  %950 = vmatpush3.msra.mxu0 %v1390_v49 }
 0x1f6   : > { %987 = vmatpush3.msra.mxu1 %v1390_v49  ;;  %951 = vmatprep.subr.mxu0 %v1390_v49 }
 0x1f7   : > { %988 = vmatprep.subr.mxu1 %v1390_v49  ;;  %952 = vmatpush3.msra.mxu0 %v1390_v49 }
 0x1f8   : > { %989 = vmatpush3.msra.mxu1 %v1390_v49  ;;  %953 = vmatprep.subr.mxu0 %v1390_v49 }
 0x1f9   : > { %990 = vmatprep.subr.mxu1 %v1390_v49  ;;  %954 = vmatpush3.msra.mxu0 %v1390_v49 }
 0x1fa   : > { %991 = vmatpush3.msra.mxu1 %v1390_v49  ;;  %955 = vmatprep.subr.mxu0 %v1390_v49 }
 0x1fb   : > { %992 = vmatprep.subr.mxu1 %v1390_v49  ;;  %956 = vmatpush3.msra.mxu0 %v1390_v49 }
 0x1fc   : > { %993 = vmatpush3.msra.mxu1 %v1390_v49  ;;  %957 = vmatprep.subr.mxu0 %v1390_v49 }
 0x1fd   : > { %994 = vmatprep.subr.mxu1 %v1390_v49  ;;  %958 = vmatpush3.msra.mxu0 %v1390_v49 }
 0x1fe   : > { %995 = vmatpush3.msra.mxu1 %v1390_v49  ;;  %959 = vmatprep.subr.mxu0 %v1390_v49 }
 0x1ff   : > { %996 = vmatprep.subr.mxu1 %v1390_v49  ;;  %960 = vmatpush3.msra.mxu0 %v1390_v49 }
 0x200   : > { %997 = vmatpush3.msra.mxu1 %v1390_v49  ;;  %961 = vmatprep.subr.mxu0 %v1390_v49 }
 0x201   : > { %998 = vmatprep.subr.mxu1 %v1390_v49  ;;  %962 = vmatpush3.msra.mxu0 %v1390_v49 }
 0x202   : > { %999 = vmatpush3.msra.mxu1 %v1390_v49  ;;  %963 = vmatprep.subr.mxu0 %v1390_v49 }
 0x203   : > { %1000 = vmatprep.subr.mxu1 %v1390_v49  ;;  %964 = vmatpush3.msra.mxu0 %v1390_v49 }
 0x204   : > { %1001 = vmatpush3.msra.mxu1 %v1390_v49  ;;  %965 = vmatprep.subr.mxu0 %v1390_v49 }
 0x205   : > { %1002 = vmatprep.subr.mxu1 %v1390_v49  ;;  %966 = vmatpush3.msra.mxu0 %v1390_v49 }
 0x206   : > { %1003 = vmatpush3.msra.mxu1 %v1390_v49  ;;  %967 = vmatprep.subr.mxu0 %v1390_v49 }
 0x207   : > { %1004 = vmatprep.subr.mxu1 %v1390_v49  ;;  %968 = vmatpush3.msra.mxu0 %v1390_v49 }
 0x208   : > { %1005 = vmatpush3.msra.mxu1 %v1390_v49  ;;  %969 = vmatprep.subr.mxu0 %v1390_v49 }
 0x209   : > { %1006 = vmatprep.subr.mxu1 %v1390_v49  ;;  %970 = vmatpush3.msra.mxu0 %v1390_v49 }
 0x20a   : > { %1007 = vmatpush3.msra.mxu1 %v1390_v49  ;;  %971 = vmatprep.subr.mxu0 %v1390_v49 }
 0x20b   : > { %1008 = vmatprep.subr.mxu1 %v1390_v49  ;;  %972 = vmatpush3.msra.mxu0 %v1390_v49 }
 0x20c   : > { %1009 = vmatpush3.msra.mxu1 %v1390_v49  ;;  %973 = vmatprep.subr.mxu0 %v1390_v49 }
 0x20d   : > { %1010 = vmatprep.subr.mxu1 %v1390_v49  ;;  %974 = vmatpush3.msra.mxu0 %v1390_v49 }
 0x20e   : > { %1011 = vmatpush3.msra.mxu1 %v1390_v49  ;;  %975 = vmatprep.subr.mxu0 %v1390_v49 }
 0x20f   : > { %1013 = vmatmul.mubr.f32.vlgmr.msra.gmra.mxu1 %v599_v50  ;;  %976 = vmatpush3.msra.mxu0 %v1390_v49 }
 0x210   : > { %977 = vmatprep.mubr.f32.mxu0 %v521_v51 }
 0x211   : > { %978 = vmatmul.mubr.f32.vlgmr.msra.gmra.mxu0 %v522_v52 }
 0x2cf   : > { %v1014_v53 = vpop.f32.mrf.mxu1 }
 0x2d1   : > { %v666_v54 = vpop.f32.mrf.mxu1  ;;  %v979_v55 = vpop.f32.mrf.mxu0 }
 0x2d2   : > { %677 = vrot.lane.b32.xlu0 %v666_v54, %s1391_s3 }
 0x2d3   : > { %v589_v56 = vpop.f32.mrf.mxu0 }
 0x2d6   : > { %679 = vrot.lane.b32.xlu0 %v1014_v53, %s1391_s3 }
 0x344   : > { %v678_v57 = vpop.permute.xlu0 %677 }
 0x345   : > { %v684_v58 = vsel %vm683_vm9, %v589_v56, %v678_v57 }
 0x346   : > { %687 = vst.msk [vmem:[%s1645_s14] sm:$0xff] %vm686_vm10, %v684_v58 }
 0x348   : > { %v680_v59 = vpop.permute.xlu0 %679 }
 0x349   : > { %v685_v60 = vsel %vm683_vm9, %v979_v55, %v680_v59 }
 0x34a   : > { %688 = vst.msk [vmem:[%s1645_s14 + $0x8] sm:$0xff] %vm686_vm10, %v685_v60 }
 0x34b PF: > { %s1877_s19 = sld [smem:[#allocation18_spill]]  ;;  %s709_s10 = sshll.u32 %s1647_s24, 4  ;;  %s1746_s10 = int_to_ptr.vmem [resolvable:$true] %s709_s10 }
 0x34c   : > { %s1878_s25 = sld [smem:[#allocation17_spill]]  ;;  %s690_s14 = scalar_lea.sflag [#allocation6], %s1614_s6 }
 0x34d   : > { %s1880_s4 = sld [smem:[#allocation27_spill]]  ;;  %s1242_s5 = scalar_lea.vmem %s1746_s10, 128 }
 0x34e   : > { %p1243_p2 = scmp.ne.s32.totalorder %s1746_s10, %s1242_s5  ;;  %s1392_s29 = smov [#allocation10]  }
 0x34f   : > { %s1246_s24 = sshll.u32 %s1392_s29, 4  ;;  %s1247_s24 = int_to_ptr.vmem [resolvable:$false] %s1246_s24 }
 0x350   : > { %p1244_p5 = pnand %p1243_p2, %p1565_p4  ;;  %s1248_s8 = scalar_lea.vmem %s1247_s24, 256 }
 0x351   : > { %s1015_s15 = smul.u32 6, %s1877_s19  ;;  %p1249_p3 = scmp.lt.s32.totalorder %s1746_s10, %s1247_s24 }
 0x352   : > { %p1245_p8 = pneg %p1244_p5  ;;  %p1250_p1 = scmp.lt.s32.totalorder %s1248_s8, %s1242_s5 }
 0x353   : > { %s706_s13 = sadd.s32 %s1878_s25, %s1015_s15 }
 0x354   : > { %s898_s21 = sshll.u32 %s706_s13, 6  ;;  %p1251_p7 = por %p1250_p1, %p1249_p3 }
 0x355   : > { %s1751_s30 = scalar_lea.hbm %s1880_s4, %s898_s21 }
 0x356   : > { %p1252_p13 = pnand %p1251_p7, %p1245_p8 }
 0x358   : > { %1255 = shalt.err (!%p1252_p13)
}
 0x359   : > { %s1256_s9 = scalar_lea.hbm %s1751_s30, 128  ;;  %s1260_s19 = scalar_lea.hbm %s1880_s4, 768 }
 0x35a   : > { %p1257_p9 = scmp.ne.s32.totalorder %s1751_s30, %s1256_s9  ;;  %p1261_p10 = scmp.lt.s32.totalorder %s1751_s30, %s1880_s4 }
 0x35b   : > { %p1262_p11 = scmp.lt.s32.totalorder %s1260_s19, %s1256_s9 }
 0x35c   : > { %p1258_p12 = pnand %p1257_p9, %p1565_p4 }
 0x35d   : > { %p1263_p0 = por %p1262_p11, %p1261_p10 }
 0x35e   : > { %p1259_p6 = pneg %p1258_p12 }
 0x360   : > { %p1264_p2 = pnand %p1263_p0, %p1259_p6 }
 0x362   : > { %1267 = shalt.err (!%p1264_p2)
}
 0x363   : > { %s1393_s13 = smov 64   ;;  %s1394_s21 = smov 192  }
 0x364   : > { %s1395_s18 = smov 4  }
 0x365   : > { %1024 = dma.vmem_to_hbm [thread:$0]  (%p1565_p4), %s1746_s10, 128, %s1751_s30, %s690_s14, %s1393_s13, %s1394_s21, %s1395_s18  }
 0x366 PF: > { %s1881_s16 = sld [smem:[#allocation16_spill]]  ;;  %p1044_p5 = scmp.ge.s32.totalorder %s1370_s28, 2 }
 0x367   : > { %s1882_s5 = sld [smem:[#allocation22_spill]] }
 0x36c   : > { %s727_s29 = sand.u32 1, %s1881_s16  }
 0x36d   : > { %p1883_p8 = scmp.ne.s32.totalorder %s1882_s5, 0  ;;  %s728_s24 = scalar_lea.sflag [#allocation6], %s727_s29 }
 0x36f   : > { %p1038_p3 = pnand %p1044_p5, %p1883_p8 }
 0x371   : > { %p1039_p1 = pneg %p1038_p3 }
 0x373   : > { %1325 = dma.done.wait (%p1039_p1), %s728_s24, 128  }
 0x374   : > { %1327 = vsyncadd (%p1039_p1), %s728_s24, 4294967168  ;;  %s25_s28 = sadd.s32 1, %s1370_s28   ;;  %s1884_s18 = sld [smem:[#allocation15_spill]] }
 0x375   : > { %p22_p7 = scmp.ge.s32.totalorder %s25_s28, 8   ;;  %s1885_s6 = sld [smem:[#allocation23_spill]] }
 0x376   : > { %s1886_s19 = smov %s1338_s20  ;;  %s1887_s20 = smov %s1577_s12 }
 0x377   : > { %s1888_s21 = smov %s1346_s22  ;;  %s1889_s22 = smov %s1350_s23 }
 0x378   : > { %s1890_s23 = smov %s1574_s7  ;;  %s1891_s24 = smov %s1362_s26 }
 0x379   : > { %s1892_s25 = smov %s1366_s27  ;;  %s1894_s27 = smov %s1898_s11 }
 0x37a   :  { %24 = sbr.rel (!%p22_p7) target bundleno = 16 (0x10), region = 121 }
 0x37b   : > { %s1893_s26 = smov %s1885_s6 }
 0x37f   :  { %741 = vsyncpa [#allocation5], 1 }
 0x380   :  { %743 = vsyncpa [#allocation5 + $0x1], 1 }
 0x381   :  { %744 = vsyncpa [#allocation8], 1 }
 0x382   :  { %746 = vsyncpa [#allocation8 + $0x1], 1 }
 0x383   :  { %747 = vsyncpa [#allocation6], 1 }
 0x384   :  { %749 = vsyncpa [#allocation6 + $0x1], 1 }

</bundles_post_ra>
